<compile_context>
chip_gen: v7x
topology: tpu7x:2x2x1
jax: 0.10.0
libtpu: 0.0.40
codegen_flags: <defaults>
</compile_context>

<pallas_src>
import functools

import jax
import jax.numpy as jnp
from jax.experimental import pallas as pl
from jax.experimental.pallas import tpu as pltpu


def _round_up(n, m):
    return ((n + m - 1) // m) * m


# ----------------------------------------------------------------------------
# Pallas kernel: 3 fused, lane-dense matmuls for BOTH networks at once.
# ----------------------------------------------------------------------------
def _unified_kernel(d_in_p, h1x2, h2x2, out3, r1, r2, output_dim, n_chunks,
                    x_ref, w_ref, b_ref, nkat_ref, grav_ref):
    # static, 16-aligned row slices into the packed bf16 weight slab
    w1 = w_ref[0:d_in_p, 0:h1x2]                      # [nkat W1 | grav U1]
    w2 = w_ref[r1:r1 + h1x2, 0:h2x2]                  # blockdiag(W2', U2)
    w3 = w_ref[r1 + r2:r1 + r2 + h2x2, 0:out3]        # blockdiag(W3', U3)

    b1 = b_ref[0:1, 0:h1x2]                           # biases stay f32
    b2 = b_ref[1:2, 0:h2x2]
    b3 = b_ref[2:3, 0:out3]

    tb = x_ref.shape[0]
    rows = tb // n_chunks
    # static unroll over independent row chunks: chunk j's matmul can overlap
    # chunk j+1's tanh (MXU and EUP are separate VLIW slots).
    for j in range(n_chunks):
        sl = pl.ds(j * rows, rows)                    # static, 8-aligned start
        xb = x_ref[sl, :].astype(jnp.bfloat16)
        h = jnp.tanh(
            jnp.dot(xb, w1, preferred_element_type=jnp.float32) + b1)
        h = jnp.tanh(
            jnp.dot(h.astype(jnp.bfloat16), w2,
                    preferred_element_type=jnp.float32) + b2)
        o = jnp.dot(h.astype(jnp.bfloat16), w3,
                    preferred_element_type=jnp.float32) + b3
        nkat_ref[sl, :] = o[:, :output_dim]
        grav_ref[sl, :] = o[:, output_dim:output_dim + 1]


# ----------------------------------------------------------------------------
# One-time parameter packing (theta folding + bf16 lane-dense slabs)
# ----------------------------------------------------------------------------
def pack_params(params, theta, input_dim, hidden_dims, output_dim):
    h1, h2 = hidden_dims
    h1x2, h2x2 = 2 * h1, 2 * h2
    out3 = _round_up(output_dim + 1, 128)             # lane width of 3rd matmul
    lane = max(h1x2, h2x2, out3)
    d_in_p = _round_up(input_dim, 16)                 # bf16 sublane-tile aligned

    # fold the theta skew corrections into downstream weights (exact algebra):
    #   (h + theta*h@Theta) @ W  ==  h @ ((I + theta*Theta) @ W)
    nw2_f = (jnp.eye(h1, dtype=jnp.float32) + theta * params["nth1"]) @ params["nw2"]
    nw3_f = (jnp.eye(h2, dtype=jnp.float32) + theta * params["nth2"]) @ params["nw3"]

    # layer 1: shared input -> concatenate along lanes; zero-pad K to d_in_p
    w1 = jnp.concatenate([params["nw1"], params["gw1"]], axis=1)      # (d_in, 2h1)
    w1 = jnp.pad(w1, ((0, d_in_p - input_dim), (0, 0)))
    b1 = jnp.concatenate([params["nb1"], params["gb1"]], axis=1)      # (1, 2h1)

    # layer 2: block-diagonal (keeps [nkat | grav] lanes independent)
    w2 = jnp.zeros((h1x2, h2x2), jnp.float32)
    w2 = w2.at[:h1, :h2].set(nw2_f)
    w2 = w2.at[h1:, h2:].set(params["gw2"])
    b2 = jnp.concatenate([params["nb2"], params["gb2"]], axis=1)      # (1, 2h2)

    # layer 3: nkat -> lanes [0:output_dim], gravity -> lane output_dim
    w3 = jnp.zeros((h2x2, out3), jnp.float32)
    w3 = w3.at[:h2, :output_dim].set(nw3_f)
    w3 = w3.at[h2:, output_dim:output_dim + 1].set(params["gw3"])
    b3 = jnp.zeros((1, out3), jnp.float32)
    b3 = b3.at[:, :output_dim].set(params["nb3"])
    b3 = b3.at[:, output_dim:output_dim + 1].set(params["gb3"])

    # pack into one bf16 weight slab + one f32 bias slab (few, large DMAs;
    # both stay VMEM-resident since their index_maps are constant)
    r1 = d_in_p
    r2 = _round_up(h1x2, 16)
    r3 = _round_up(h2x2, 16)

    def _pad_to(a, rows, cols):
        return jnp.pad(a, ((0, rows - a.shape[0]), (0, cols - a.shape[1])))

    w_slab = jnp.concatenate(
        [_pad_to(w1, r1, lane), _pad_to(w2, r2, lane), _pad_to(w3, r3, lane)],
        axis=0).astype(jnp.bfloat16)                      # (r1+r2+r3, lane) bf16
    b_slab = jnp.concatenate(
        [_pad_to(b1, 1, lane), _pad_to(b2, 1, lane), _pad_to(b3, 1, lane),
         jnp.zeros((5, lane), jnp.float32)], axis=0)      # (8, lane) f32

    meta = dict(d_in=input_dim, d_in_p=d_in_p, h1x2=h1x2, h2x2=h2x2, out3=out3,
                r1=r1, r2=r2, output_dim=output_dim)
    return w_slab, b_slab, meta


# ----------------------------------------------------------------------------
# Python wrapper
# ----------------------------------------------------------------------------
def unified_universe_forward(x, w_slab, b_slab, meta, tile_b=1024):
    """x: (B, input_dim) f32 -> (nkat (B, output_dim) f32, grav (B, 1) f32)."""
    B = x.shape[0]
    d_in = meta["d_in"]
    d_in_p = meta["d_in_p"]
    output_dim = meta["output_dim"]

    # only pad the feature dim if the model's input_dim is not tile-aligned
    if d_in_p != d_in:
        x = jnp.pad(x, ((0, 0), (0, d_in_p - d_in)))

    # batch tiling: tb multiple of 8; NO wrapper-side batch pad (ragged last
    # block is handled by Pallas boundary masking).
    b8 = _round_up(B, 8)
    tb = min(_round_up(tile_b, 8), b8)
    if b8 >= 16 and pl.cdiv(b8, tb) < 2:
        # guarantee >= 2 grid steps so the "parallel" batch axis can shard
        # across both TensorCores on v7x
        tb = _round_up(pl.cdiv(b8, 2), 8)
    grid = (pl.cdiv(B, tb),)

    # split large tiles into 2-4 independent row chunks for MXU/EUP overlap
    n_chunks = 1
    for c in (4, 2):
        if tb % (c * 8) == 0 and tb // c >= 128:
            n_chunks = c
            break

    kernel = pl.pallas_call(
        functools.partial(_unified_kernel, d_in_p, meta["h1x2"], meta["h2x2"],
                          meta["out3"], meta["r1"], meta["r2"], output_dim,
                          n_chunks),
        out_shape=(jax.ShapeDtypeStruct((B, output_dim), jnp.float32),
                   jax.ShapeDtypeStruct((B, 1), jnp.float32)),
        grid_spec=pltpu.PrefetchScalarGridSpec(
            num_scalar_prefetch=0,
            grid=grid,
            in_specs=[
                pl.BlockSpec((tb, d_in_p), lambda i: (i, 0)),
                # weights / biases: constant block -> stay VMEM resident
                pl.BlockSpec(w_slab.shape, lambda i: (0, 0)),
                pl.BlockSpec(b_slab.shape, lambda i: (0, 0)),
            ],
            out_specs=(
                pl.BlockSpec((tb, output_dim), lambda i: (i, 0)),
                pl.BlockSpec((tb, 1), lambda i: (i, 0)),
            ),
        ),
        compiler_params=pltpu.CompilerParams(
            dimension_semantics=("parallel",)),
    )
    nkat, grav = kernel(x, w_slab, b_slab)
    return nkat, grav


# ----------------------------------------------------------------------------
# Deterministic parameter construction (matches module __init__ shapes)
# ----------------------------------------------------------------------------
def init_params(key, input_dim, hidden_dims, output_dim):
    assert len(hidden_dims) == 2, "this script instantiates hidden_dims of length 2"
    h1, h2 = hidden_dims
    keys = jax.random.split(key, 16)

    def lin(k, fan_in, fan_out):
        scale = 1.0 / jnp.sqrt(jnp.float32(fan_in))
        return jax.random.uniform(k, (fan_in, fan_out), jnp.float32, -scale, scale)

    def skew(k, dim):
        a = jax.random.normal(k, (dim, dim), jnp.float32) * 0.05
        return a - a.T  # skew-symmetric Theta matrix

    return {
        # NKAT network
        "nw1": lin(keys[0], input_dim, h1),
        "nb1": jnp.zeros((1, h1), jnp.float32),
        "nth1": skew(keys[1], h1),
        "nw2": lin(keys[2], h1, h2),
        "nb2": jnp.zeros((1, h2), jnp.float32),
        "nth2": skew(keys[3], h2),
        "nw3": lin(keys[4], h2, output_dim),
        "nb3": jnp.zeros((1, output_dim), jnp.float32),
        # Quantum gravity network
        "gw1": lin(keys[5], input_dim, h1),
        "gb1": jnp.zeros((1, h1), jnp.float32),
        "gw2": lin(keys[6], h1, h2),
        "gb2": jnp.zeros((1, h2), jnp.float32),
        "gw3": lin(keys[7], h2, 1),
        "gb3": jnp.zeros((1, 1), jnp.float32),
    }


# ----------------------------------------------------------------------------
# Pure-JAX f32 reference (original, un-folded math) for sanity check
# ----------------------------------------------------------------------------
def reference_forward(x, p, theta):
    h = jnp.tanh(x @ p["nw1"] + p["nb1"])
    h = h + theta * (h @ p["nth1"])
    h = jnp.tanh(h @ p["nw2"] + p["nb2"])
    h = h + theta * (h @ p["nth2"])
    nkat = h @ p["nw3"] + p["nb3"]

    g = jnp.tanh(x @ p["gw1"] + p["gb1"])
    g = jnp.tanh(g @ p["gw2"] + p["gb2"])
    grav = g @ p["gw3"] + p["gb3"]
    return nkat, grav


if __name__ == "__main__":
    # Small shapes consistent with the module: x is [batch, input_dim].
    batch = 8
    input_dim = 32
    hidden_dims = [64, 64]
    output_dim = 32
    theta = 0.1

    key = jax.random.PRNGKey(0)
    k_x, k_p = jax.random.split(key)
    x = jax.random.normal(k_x, (batch, input_dim), jnp.float32)
    params = init_params(k_p, input_dim, hidden_dims, output_dim)

    # one-time pack (theta fold + bf16 lane-dense slabs)
    w_slab, b_slab, meta = pack_params(params, theta, input_dim, hidden_dims,
                                       output_dim)

    nkat_out, grav_out = unified_universe_forward(x, w_slab, b_slab, meta)
    nkat_out = jax.block_until_ready(nkat_out)
    grav_out = jax.block_until_ready(grav_out)

    # correctness check against the pure-f32 reference (tolerance loosened
    # because the kernel uses bf16 matmul operands with f32 accumulation)
    nkat_ref, grav_ref = reference_forward(x, params, theta)
    assert nkat_out.shape == (batch, output_dim)
    assert grav_out.shape == (batch, 1)
    assert jnp.allclose(nkat_out, nkat_ref, atol=5e-2, rtol=5e-2), (
        float(jnp.max(jnp.abs(nkat_out - nkat_ref))))
    assert jnp.allclose(grav_out, grav_ref, atol=5e-2, rtol=5e-2), (
        float(jnp.max(jnp.abs(grav_out - grav_ref))))

    print("KERNEL_OK")
</pallas_src>

<mosaic_0001>
module attributes {stable_mosaic.version = 11 : i64} {
  func.func @_unified_kernel(%arg0: i32, %arg1: memref<8x32xf32, #tpu.memory_space<vmem>>, %arg2: memref<288x128xbf16, #tpu.memory_space<vmem>>, %arg3: memref<8x128xf32, #tpu.memory_space<vmem>>, %arg4: memref<8x32xf32, #tpu.memory_space<vmem>>, %arg5: memref<8x1xf32, #tpu.memory_space<vmem>>) attributes {dimension_semantics = [#tpu.dimension_semantics<parallel>], iteration_bounds = array<i64: 1>, scalar_prefetch = 0 : i64, scratch_operands = 0 : i64, tpu.core_type = #tpu.core_type<tc>, window_params = [{transform_indices = @transform_0, window_bounds = array<i64: 8, 32>}, {pipeline_mode = #tpu.pipeline_mode<synchronous>, transform_indices = @transform_1, window_bounds = array<i64: 288, 128>}, {pipeline_mode = #tpu.pipeline_mode<synchronous>, transform_indices = @transform_2, window_bounds = array<i64: 8, 128>}, {transform_indices = @transform_3, window_bounds = array<i64: 8, 32>}, {transform_indices = @transform_4, window_bounds = array<i64: 8, 1>}]} {
    %c0 = arith.constant 0 : index
    %c0_0 = arith.constant 0 : index
    %0 = vector.load %arg2[%c0, %c0_0] : memref<288x128xbf16, #tpu.memory_space<vmem>>, vector<32x128xbf16>
    %c32 = arith.constant 32 : index
    %c0_1 = arith.constant 0 : index
    %1 = vector.load %arg2[%c32, %c0_1] : memref<288x128xbf16, #tpu.memory_space<vmem>>, vector<128x128xbf16>
    %c160 = arith.constant 160 : index
    %c0_2 = arith.constant 0 : index
    %2 = vector.load %arg2[%c160, %c0_2] : memref<288x128xbf16, #tpu.memory_space<vmem>>, vector<128x128xbf16>
    %c0_3 = arith.constant 0 : index
    %c0_4 = arith.constant 0 : index
    %3 = vector.load %arg3[%c0_3, %c0_4] : memref<8x128xf32, #tpu.memory_space<vmem>>, vector<1x128xf32>
    %c1 = arith.constant 1 : index
    %c0_5 = arith.constant 0 : index
    %4 = vector.load %arg3[%c1, %c0_5] : memref<8x128xf32, #tpu.memory_space<vmem>>, vector<1x128xf32>
    %c2 = arith.constant 2 : index
    %c0_6 = arith.constant 0 : index
    %5 = vector.load %arg3[%c2, %c0_6] : memref<8x128xf32, #tpu.memory_space<vmem>>, vector<1x128xf32>
    %c0_7 = arith.constant 0 : index
    %c0_8 = arith.constant 0 : index
    %6 = vector.load %arg1[%c0_7, %c0_8] : memref<8x32xf32, #tpu.memory_space<vmem>>, vector<8x32xf32>
    %7 = arith.truncf %6 : vector<8x32xf32> to vector<8x32xbf16>
    %cst = arith.constant dense<0.000000e+00> : vector<8x128xf32>
    %8 = tpu.matmul %7, %0, %cst {dimension_numbers = #tpu.dot_dimension_numbers<[1], [0], [0], [1], [0, 0, 1, 1], [], []>} : vector<8x32xbf16>, vector<32x128xbf16>, vector<8x128xf32> -> vector<8x128xf32>
    %9 = vector.broadcast %3 : vector<1x128xf32> to vector<8x128xf32>
    %10 = arith.addf %8, %9 : vector<8x128xf32>
    %11 = math.tanh %10 : vector<8x128xf32>
    %12 = arith.truncf %11 : vector<8x128xf32> to vector<8x128xbf16>
    %cst_9 = arith.constant dense<0.000000e+00> : vector<8x128xf32>
    %13 = tpu.matmul %12, %1, %cst_9 {dimension_numbers = #tpu.dot_dimension_numbers<[1], [0], [0], [1], [0, 0, 1, 1], [], []>} : vector<8x128xbf16>, vector<128x128xbf16>, vector<8x128xf32> -> vector<8x128xf32>
    %14 = vector.broadcast %4 : vector<1x128xf32> to vector<8x128xf32>
    %15 = arith.addf %13, %14 : vector<8x128xf32>
    %16 = math.tanh %15 : vector<8x128xf32>
    %17 = arith.truncf %16 : vector<8x128xf32> to vector<8x128xbf16>
    %cst_10 = arith.constant dense<0.000000e+00> : vector<8x128xf32>
    %18 = tpu.matmul %17, %2, %cst_10 {dimension_numbers = #tpu.dot_dimension_numbers<[1], [0], [0], [1], [0, 0, 1, 1], [], []>} : vector<8x128xbf16>, vector<128x128xbf16>, vector<8x128xf32> -> vector<8x128xf32>
    %19 = vector.broadcast %5 : vector<1x128xf32> to vector<8x128xf32>
    %20 = arith.addf %18, %19 : vector<8x128xf32>
    %21 = vector.extract_strided_slice %20 {offsets = [0, 0], sizes = [8, 32], strides = [1, 1]} : vector<8x128xf32> to vector<8x32xf32>
    %c0_11 = arith.constant 0 : index
    %c0_12 = arith.constant 0 : index
    %22 = vector.load %arg4[%c0_11, %c0_12] : memref<8x32xf32, #tpu.memory_space<vmem>>, vector<8x32xf32>
    tpu.vector_store %arg4[%c0_11, %c0_12], %21 {strides = array<i32>} : memref<8x32xf32, #tpu.memory_space<vmem>>, vector<8x32xf32>,
    %23 = vector.extract_strided_slice %20 {offsets = [0, 32], sizes = [8, 1], strides = [1, 1]} : vector<8x128xf32> to vector<8x1xf32>
    %c0_13 = arith.constant 0 : index
    %c0_14 = arith.constant 0 : index
    %24 = vector.load %arg5[%c0_13, %c0_14] : memref<8x1xf32, #tpu.memory_space<vmem>>, vector<8x1xf32>
    tpu.vector_store %arg5[%c0_13, %c0_14], %23 {strides = array<i32>} : memref<8x1xf32, #tpu.memory_space<vmem>>, vector<8x1xf32>,
    return
  }
  func.func @transform_0(%arg0: i32) -> (i32, i32) {
    %c0_i32 = arith.constant 0 : i32
    %c0_i32_0 = arith.constant 0 : i32
    return %arg0, %c0_i32 : i32, i32
  }
  func.func @transform_1(%arg0: i32) -> (i32, i32) {
    %c0_i32 = arith.constant 0 : i32
    %c0_i32_0 = arith.constant 0 : i32
    %c0_i32_1 = arith.constant 0 : i32
    return %c0_i32, %c0_i32_0 : i32, i32
  }
  func.func @transform_2(%arg0: i32) -> (i32, i32) {
    %c0_i32 = arith.constant 0 : i32
    %c0_i32_0 = arith.constant 0 : i32
    %c0_i32_1 = arith.constant 0 : i32
    return %c0_i32, %c0_i32_0 : i32, i32
  }
  func.func @transform_3(%arg0: i32) -> (i32, i32) {
    %c0_i32 = arith.constant 0 : i32
    %c0_i32_0 = arith.constant 0 : i32
    return %arg0, %c0_i32 : i32, i32
  }
  func.func @transform_4(%arg0: i32) -> (i32, i32) {
    %c0_i32 = arith.constant 0 : i32
    %c0_i32_0 = arith.constant 0 : i32
    return %arg0, %c0_i32 : i32, i32
  }
}

</mosaic_0001>

<bundles_post_ra>
// kernel: tpu_custom_call.1
= control target key start
LH: loop header
LB: loop body
LE: loop exit
PB: predicated region body
PF: predicated region fallthrough
CT: control target
= control target key end

     0   :  { %10 = vsyncpa [#allocation3], 0  ;;  %s698_s0 = inlined_call_operand.hbm [shape: f32[8,32], index: 0, kind: input, shape index: {}]   ;;  %s699_s1 = inlined_call_operand.hbm [shape: bf16[288,128], index: 1, kind: input, shape index: {}]   ;;  %s700_s2 = inlined_call_operand.hbm [shape: f32[8,128], index: 2, kind: input, shape index: {}]   ;;  %s701_s3 = inlined_call_operand.hbm [shape: f32[8,32], index: 3, kind: output, shape index: {0}]   ;;  %s702_s4 = inlined_call_operand.vmem [shape: f32[8,1], index: 4, kind: output, shape index: {1}]  }
   0x1   :  { %11 = vsyncpa [#allocation6], 0 }
   0x2   :  { %12 = vsyncpa [#allocation4], 0  ;;  %s587_s15 = smov [#allocation5]   ;;  %s493_s19 = scalar_lea.hbm %s699_s1, 2304 }
   0x3   :  { %s28_s16 = sshll.u32 %s587_s15, 4  ;;  %p494_p0 = scmp.ne.s32.totalorder %s699_s1, %s493_s19  ;;  %s29_s16 = int_to_ptr.vmem [resolvable:$true] %s28_s16 }
   0x4   :  { %p497_p1 = scmp.lt.u32.totalorder %s493_s19, %s699_s1 }
   0x6   :  { %p499_p2 = pnand %p497_p1, %p494_p0 }
   0x8   :  { %502 = shalt.err (!%p499_p2)
}
   0x9   :  { %s503_s24 = scalar_lea.vmem %s29_s16, 2304  ;;  %p508_p4 = scmp.lt.s32.totalorder %s29_s16, %s29_s16 }
   0xa   :  { %p504_p3 = scmp.ne.s32.totalorder %s29_s16, %s503_s24  ;;  %p509_p5 = scmp.lt.s32.totalorder %s503_s24, %s503_s24 }
   0xc   :  { %p510_p6 = por %p509_p5, %p508_p4 }
   0xe   :  { %p511_p7 = pnand %p510_p6, %p504_p3 }
  0x10   :  { %514 = shalt.err (!%p511_p7)
}
  0x11   :  { %s588_s25 = smov 64   ;;  %s589_s26 = smov 4  }
  0x12   :  { %34 = dma.hbm_to_vmem [thread:$0]  %s699_s1, 2304, %s29_s16, [#allocation6], %s588_s25, %s588_s25, %s589_s26  }
  0x13   :  { %s590_s29 = smov [#allocation2]   ;;  %s591_s5 = smov [#allocation7]  }
  0x14   :  { %s19_s30 = sshll.u32 %s590_s29, 4  ;;  %s41_s6 = sshll.u32 %s591_s5, 4  ;;  %s20_s30 = int_to_ptr.vmem [resolvable:$true] %s19_s30  ;;  %s42_s6 = int_to_ptr.vmem [resolvable:$true] %s41_s6 }
  0x15   :  { %s515_s9 = scalar_lea.hbm %s698_s0, 128 }
  0x16   :  { %p516_p8 = scmp.ne.s32.totalorder %s698_s0, %s515_s9  ;;  %p519_p9 = scmp.lt.u32.totalorder %s515_s9, %s698_s0 }
  0x18   :  { %p521_p10 = pnand %p519_p9, %p516_p8 }
  0x1a   :  { %524 = shalt.err (!%p521_p10)
}
  0x1b   :  { %s525_s1 = scalar_lea.vmem %s20_s30, 128  ;;  %p530_p12 = scmp.lt.s32.totalorder %s20_s30, %s20_s30 }
  0x1c   :  { %p526_p11 = scmp.ne.s32.totalorder %s20_s30, %s525_s1  ;;  %p531_p13 = scmp.lt.s32.totalorder %s525_s1, %s525_s1 }
  0x1e   :  { %p532_p0 = por %p531_p13, %p530_p12 }
  0x20   :  { %p533_p1 = pnand %p532_p0, %p526_p11 }
  0x22   :  { %536 = shalt.err (!%p533_p1)
}
  0x23   :  { %22 = dma.hbm_to_vmem [thread:$0]  %s698_s0, 128, %s20_s30, [#allocation3]  }
  0x24   :  { %s537_s18 = scalar_lea.hbm %s700_s2, 128 }
  0x25   :  { %p538_p2 = scmp.ne.s32.totalorder %s700_s2, %s537_s18  ;;  %p541_p3 = scmp.lt.u32.totalorder %s537_s18, %s700_s2 }
  0x27   :  { %p543_p4 = pnand %p541_p3, %p538_p2 }
  0x29   :  { %546 = shalt.err (!%p543_p4)
}
  0x2a   :  { %s547_s23 = scalar_lea.vmem %s42_s6, 128  ;;  %p552_p6 = scmp.lt.s32.totalorder %s42_s6, %s42_s6 }
  0x2b   :  { %p548_p5 = scmp.ne.s32.totalorder %s42_s6, %s547_s23  ;;  %p553_p7 = scmp.lt.s32.totalorder %s547_s23, %s547_s23 }
  0x2d   :  { %p554_p8 = por %p553_p7, %p552_p6 }
  0x2f   :  { %p555_p9 = pnand %p554_p8, %p548_p5 }
  0x31   :  { %558 = shalt.err (!%p555_p9)
}
  0x32   :  { %44 = dma.hbm_to_vmem [thread:$0]  %s700_s2, 128, %s42_s6, [#allocation6]  }
  0x33   :  { %581 = dma.done.wait [#allocation3], 128  }
  0x34   :  { %582 = vsyncadd [#allocation3], 4294967168 }
  0x35   :  { %583 = dma.done.wait [#allocation6], 2432  }
  0x36   :  { %584 = vsyncadd [#allocation6], 4294964864  ;;  %v592_v0 = vmov 0.0   ;;  %vm593_vm0 = vmmov 0   ;;  %v471_v1 = vld [vmem:[#allocation5] sm:$0xff]   ;;  %v472_v2 = vld [vmem:[#allocation5 + $0x8] sm:$0xff]  }
  0x37   :  { %414 = vmatprep.subr.bf16.mxu0 %v592_v0  ;;  %418 = vmatprep.mubr.msk.bf16.mxu0 %vm593_vm0, %v592_v0  ;;  %v94_v3 = vld [vmem:[#allocation2] sm:$0xff]  ;;  %v473_v4 = vld [vmem:[#allocation5 + $0x10] sm:$0xff]   ;;  %vm112_vm1 = vcmask 261120   ;;  %v475_v7 = vld [vmem:[#allocation5 + $0x20] sm:$0xff]   ;;  %s594_s2 = smov [#allocation8]   ;;  %s595_s26 = smov 96  }
  0x38   :  { %422 = vmatprep.subr.bf16.mxu1 %v592_v0  ;;  %438 = vmatprep.mubr.msk.bf16.mxu1 %vm593_vm0, %v592_v0  ;;  %v95_v5 = vpack.c.bf16 %v94_v3, %v94_v3  ;;  %v474_v6 = vld [vmem:[#allocation5 + $0x18] sm:$0xff]   ;;  %v476_v8 = vld [vmem:[#allocation5 + $0x28] sm:$0xff]   ;;  %v477_v9 = vld [vmem:[#allocation5 + $0x30] sm:$0xff]   ;;  %s357_s25 = sshll.u32 %s594_s2, 4  ;;  %s358_s25 = int_to_ptr.vmem [resolvable:$true] %s357_s25 }
  0x39   :  { %415 = vmatpush3.bf16.msra.mxu0 %v471_v1  ;;  %423 = vmatpush3.bf16.msra.mxu1 %v473_v4  ;;  %v478_v10 = vld [vmem:[#allocation5 + $0x38] sm:$0xff]   ;;  %v479_v11 = vld [vmem:[#allocation5 + $0x40] sm:$0xff]   ;;  %v480_v12 = vld [vmem:[#allocation5 + $0x48] sm:$0xff]   ;;  %s559_s27 = scalar_lea.vmem %s358_s25, 128  ;;  %p564_p11 = scmp.lt.s32.totalorder %s358_s25, %s358_s25 }
  0x3a   :  { %416 = vmatprep.subr.bf16.mxu0 %v592_v0  ;;  %424 = vmatprep.subr.bf16.mxu1 %v592_v0  ;;  %v481_v13 = vld [vmem:[#allocation5 + $0x50] sm:$0xff]   ;;  %v482_v14 = vld [vmem:[#allocation5 + $0x58] sm:$0xff]   ;;  %v483_v15 = vld [vmem:[#allocation5 + $0x60] sm:$0xff]   ;;  %p560_p10 = scmp.ne.s32.totalorder %s358_s25, %s559_s27  ;;  %p565_p12 = scmp.lt.s32.totalorder %s559_s27, %s559_s27 }
  0x3b   :  { %v484_v16 = vld [vmem:[#allocation5 + $0x68] sm:$0xff]   ;;  %v371_v17 = vld [vmem:[#allocation7] ss:$0 sm:$0xff]  ;;  %v486_v26 = vld [vmem:[#allocation5 + $0x78] sm:$0xff]  }
  0x3c   :  { %v485_v25 = vld [vmem:[#allocation5 + $0x70] sm:$0xff]   ;;  %v487_v27 = vld [vmem:[#allocation5 + $0x80] sm:$0xff]   ;;  %v488_v28 = vld [vmem:[#allocation5 + $0x88] sm:$0xff]   ;;  %p566_p13 = por %p565_p12, %p564_p11 }
  0x3d   :  { %417 = vmatpush3.bf16.msra.mxu0 %v472_v2  ;;  %425 = vmatpush3.bf16.msra.mxu1 %v474_v6  ;;  %v375_v29 = vld [vmem:[#allocation7 + $0x1] ss:$0 sm:$0xff]  ;;  %v384_v37 = vld [vmem:[#allocation7 + $0x2] ss:$0 sm:$0xff] }
  0x3e   :  { %442 = vmatprep.subr.bf16.mxu0 %v592_v0  ;;  %426 = vmatprep.subr.bf16.mxu1 %v592_v0  ;;  %p567_p0 = pnand %p566_p13, %p560_p10 }
  0x40   :  { %419 = vmatmul.mubr.msk.bf16.vlgmr.msra.gmra.mrb[0].mxu0 %vm112_vm1, %v95_v5 }
  0x41   :  { %458 = vmatprep.mubr.msk.bf16.mxu0 %vm593_vm0, %v592_v0  ;;  %427 = vmatpush3.bf16.msra.mxu1 %v475_v7 }
  0x42   :  { %428 = vmatprep.subr.bf16.mxu1 %v592_v0  ;;  %443 = vmatpush3.bf16.msra.mxu0 %v481_v13 }
  0x43   :  { %444 = vmatprep.subr.bf16.mxu0 %v592_v0 }
  0x45   :  { %429 = vmatpush3.bf16.msra.mxu1 %v476_v8 }
  0x46   :  { %430 = vmatprep.subr.bf16.mxu1 %v592_v0  ;;  %445 = vmatpush3.bf16.msra.mxu0 %v482_v14 }
  0x47   :  { %446 = vmatprep.subr.bf16.mxu0 %v592_v0 }
  0x49   :  { %431 = vmatpush3.bf16.msra.mxu1 %v477_v9 }
  0x4a   :  { %432 = vmatprep.subr.bf16.mxu1 %v592_v0  ;;  %447 = vmatpush3.bf16.msra.mxu0 %v483_v15 }
  0x4b   :  { %448 = vmatprep.subr.bf16.mxu0 %v592_v0 }
  0x4d   :  { %433 = vmatpush3.bf16.msra.mxu1 %v478_v10 }
  0x4e   :  { %434 = vmatprep.subr.bf16.mxu1 %v592_v0  ;;  %449 = vmatpush3.bf16.msra.mxu0 %v484_v16 }
  0x4f   :  { %450 = vmatprep.subr.bf16.mxu0 %v592_v0 }
  0x51   :  { %435 = vmatpush3.bf16.msra.mxu1 %v479_v11 }
  0x52   :  { %436 = vmatprep.subr.bf16.mxu1 %v592_v0  ;;  %451 = vmatpush3.bf16.msra.mxu0 %v485_v25 }
  0x53   :  { %452 = vmatprep.subr.bf16.mxu0 %v592_v0 }
  0x55   :  { %437 = vmatpush3.bf16.msra.mxu1 %v480_v12 }
  0x56   :  { %453 = vmatpush3.bf16.msra.mxu0 %v486_v26 }
  0x57   :  { %454 = vmatprep.subr.bf16.mxu0 %v592_v0 }
  0x5a   :  { %455 = vmatpush3.bf16.msra.mxu0 %v487_v27 }
  0x5b   :  { %456 = vmatprep.subr.bf16.mxu0 %v592_v0 }
  0x5e   :  { %457 = vmatpush3.bf16.msra.mxu0 %v488_v28 }
 0x113   :  { %v150_v18 = vpop.f32.mrb[0].mxu0 }
 0x114   :  { %v151_v19 = vadd.f32 %v371_v17, %v150_v18  ;;  %v420_v20 = vpop.f32.mrb[1].mxu0 }
 0x115   :  { %v153_v21 = vpop.f32.mrb[2].mxu0 }
 0x116   :  { %489 = vtanh.f32 %v151_v19  ;;  %v421_v22 = vpop.f32.mrb[3].mxu0 }
 0x120   :  { %v490_v23 = vpop.eup %489 }
 0x121   :  { %v157_v24 = vpack.c.bf16 %v490_v23, %v490_v23 }
 0x123   :  { %439 = vmatmul.mubr.bf16.vlgmr.msra.gmra.mrb[0].mxu1 %v157_v24 }
 0x1f6   :  { %v244_v30 = vpop.f32.mrb[0].mxu1 }
 0x1f7   :  { %v245_v31 = vadd.f32 %v375_v29, %v244_v30  ;;  %v440_v32 = vpop.f32.mrb[1].mxu1 }
 0x1f8   :  { %v247_v33 = vpop.f32.mrb[2].mxu1 }
 0x1f9   :  { %491 = vtanh.f32 %v245_v31  ;;  %v441_v34 = vpop.f32.mrb[3].mxu1 }
 0x203   :  { %v492_v35 = vpop.eup %491 }
 0x204   :  { %v251_v36 = vpack.c.bf16 %v492_v35, %v492_v35 }
 0x206   :  { %459 = vmatmul.mubr.bf16.vlgmr.msra.gmra.mrb[4].mxu0 %v251_v36 }
 0x2d9   :  { %v338_v38 = vpop.f32.mrb[4].mxu0 }
 0x2da   :  { %v339_v39 = vadd.f32 %v384_v37, %v338_v38  ;;  %v460_v40 = vpop.f32.mrb[5].mxu0 }
 0x2db   :  { %v341_v41 = vpop.f32.mrb[6].mxu0 }
 0x2dc   :  { %344 = vst.msk [vmem:[#allocation8] sm:$0xff] %vm112_vm1, %v339_v39  ;;  %v461_v42 = vpop.f32.mrb[7].mxu0  ;;  %346 = vrot.lane.b32.xlu0 %v339_v39, %s595_s26 }
 0x2dd   :  { %570 = shalt.err (!%p567_p0)
}
 0x2de   :  { %s571_s30 = scalar_lea.hbm %s701_s3, 128 }
 0x2df   :  { %p572_p1 = scmp.ne.s32.totalorder %s701_s3, %s571_s30  ;;  %p575_p2 = scmp.lt.u32.totalorder %s571_s30, %s701_s3 }
 0x2e1   :  { %p577_p3 = pnand %p575_p2, %p572_p1 }
 0x2e3   :  { %580 = shalt.err (!%p577_p3)
}
 0x2e4   :  { %360 = dma.vmem_to_hbm [thread:$0]  %s358_s25, 128, %s701_s3, [#allocation4]   ;;  %vm349_vm2 = vcmask 7168  }
 0x34e   :  { %v347_v43 = vpop.permute.xlu0 %346 }
 0x34f   :  { %350 = vst.msk [vmem:[%s702_s4] sm:$0xff] %vm349_vm2, %v347_v43 }
 0x350   :  { %585 = dma.done.wait [#allocation4], 128  }
 0x351   :  { %586 = vsyncadd [#allocation4], 4294967168 }
 0x352   :  { %368 = vsyncpa [#allocation3], 1 }
 0x353   :  { %369 = vsyncpa [#allocation6], 1 }
 0x354   :  { %370 = vsyncpa [#allocation4], 1 }

</bundles_post_ra>
